<compile_context>
chip_gen: v7x
topology: tpu7x:2x2x1
jax: 0.10.0
libtpu: 0.0.40
codegen_flags: <defaults>
</compile_context>

<pallas_src>
import functools
import math

import jax
import jax.numpy as jnp
from jax.experimental import pallas as pl
from jax.experimental.pallas import tpu as pltpu


def _cdiv(a, b):
    return (a + b - 1) // b


def _make_cnn_encoder_kernel(L_pad, CB, NC):
    """Kernel closure over static sizes.

    L_pad : padded sequence length (multiple of 8)
    CB    : sentences per in-kernel chunk
    NC    : chunks per grid step (TB = NC * CB)
    """

    def kernel(x_ref, w_ref, b_ref, o_ref):
        # x_ref: (TB, L_pad+2, C_pad) bf16  -- embeddings with 1-row zero halo
        # w_ref: (3, C_pad, H_pad)    bf16  -- per-tap conv weights (+ poison row)
        # b_ref: (1, H_pad)           f32   -- conv bias
        # o_ref: (TB, H_pad)          f32   -- pooled output (lane-dense)
        Hp = o_ref.shape[-1]
        Cp = x_ref.shape[-1]
        b_row = b_ref[...]                                     # (1, H_pad)

        def chunk(s):
            # s: start sentence of this chunk within the grid-step block.
            xc = x_ref[pl.ds(s, CB), :, :]                     # (CB, L_pad+2, C_pad)
            # kernel=3 conv == 3 accumulating MXU matmuls on shifted slices.
            acc = jnp.dot(xc[:, 0:L_pad, :].reshape(CB * L_pad, Cp), w_ref[0],
                          preferred_element_type=jnp.float32)
            acc = acc + jnp.dot(xc[:, 1:1 + L_pad, :].reshape(CB * L_pad, Cp),
                                w_ref[1], preferred_element_type=jnp.float32)
            acc = acc + jnp.dot(xc[:, 2:2 + L_pad, :].reshape(CB * L_pad, Cp),
                                w_ref[2], preferred_element_type=jnp.float32)
            # MaxPool1d over the sequence axis; padded seq rows were poisoned
            # to ~-1e30 via the spare-lane trick, so no mask is needed here.
            pooled = jnp.max(acc.reshape(CB, L_pad, Hp), axis=1)   # (CB, Hp)
            # bias + ReLU after the max (identical result, 1/L the VPU work)
            o_ref[pl.ds(s, CB), :] = jnp.maximum(pooled + b_row, 0.0)

        if NC == 1:
            chunk(0)
        else:
            def body(c, carry):
                chunk(pl.multiple_of(c * CB, CB))
                return carry
            jax.lax.fori_loop(0, NC, body, 0)

    return kernel


def cnn_sentence_encoder(word, pos1, pos2, params, *, target_m=2048):
    """Full forward: embedding gather (JAX glue) + conv/relu/maxpool (Pallas)."""
    word_emb = params["word_emb"]        # (V, Dw)
    pos1_emb = params["pos1_emb"]        # (2*L, Dp)
    pos2_emb = params["pos2_emb"]        # (2*L, Dp)
    conv_w = params["conv_w"]            # (H, C_in, 3)  -- PyTorch Conv1d layout
    conv_b = params["conv_b"]            # (H,)

    # --- Embedding (gather glue), cast to bf16 for the MXU -----------------
    x = jnp.concatenate(
        [word_emb[word], pos1_emb[pos1], pos2_emb[pos2]], axis=-1
    ).astype(jnp.bfloat16)                                      # (B, L, C_in)
    B, L, C_in = x.shape
    H = conv_w.shape[0]

    L_pad = _cdiv(L, 8) * 8              # sublane-aligned sequence length
    need_mask = L_pad != L               # padded seq rows must not win the max
    # keep one spare lane for the padded-row poison flag when needed
    C_pad = _cdiv(C_in + (1 if need_mask else 0), 128) * 128
    H_pad = _cdiv(H, 128) * 128          # lane-dense output channels

    # --- in-kernel chunking: keep the live f32 accumulator <= ~128 KiB -----
    chunk_rows = max(L_pad, (32 * 1024) // H_pad)   # 32K f32 elems = 128 KiB
    CB = max(1, chunk_rows // L_pad)                # sentences per chunk

    # --- sentences per grid step (TB) ---------------------------------------
    TB = max(1, target_m // L_pad)                  # ~target_m matmul rows/step
    TB = min(TB, max(1, _cdiv(B, 2)))               # >=2 grid steps when B allows (v7x)
    unit = math.lcm(8, CB)                          # aligned out block + whole chunks
    TB = _cdiv(TB, unit) * unit
    NC = TB // CB
    B_pad = _cdiv(B, TB) * TB
    grid = (B_pad // TB,)

    # --- input layout: (B_pad, L_pad+2, C_pad), one zero halo row each side -
    x_halo = jnp.pad(x, ((0, B_pad - B), (1, L_pad + 1 - L), (0, C_pad - C_in)))
    if need_mask:
        # 1.0 poison flag on padded sequence rows (read only by the centre tap)
        x_halo = x_halo.at[:, L + 1:L_pad + 1, C_in].set(1.0)

    # --- per-tap weights: (H, C_in, 3) -> (3, C_in, H), padded, + poison row
    w_taps = jnp.transpose(conv_w, (2, 1, 0)).astype(jnp.float32)   # (3, C_in, H)
    w_full = jnp.zeros((3, C_pad, H_pad), jnp.float32)
    w_full = w_full.at[:, :C_in, :H].set(w_taps)
    if need_mask:
        # centre tap reads the flag lane -> padded rows' conv out ~ -1e30
        # (-1e30 is representable in bf16; valid rows never touch this lane)
        w_full = w_full.at[1, C_in, :].set(-1e30)
    w_full = w_full.astype(jnp.bfloat16)
    b_row = jnp.pad(conv_b.astype(jnp.float32), (0, H_pad - H)).reshape(1, H_pad)

    kernel = _make_cnn_encoder_kernel(L_pad, CB, NC)

    # explicit VMEM budget: double-buffered x/out blocks + resident weights
    x_blk = TB * (L_pad + 2) * C_pad * 2
    o_blk = TB * H_pad * 4
    w_bytes = 3 * C_pad * H_pad * 2 + H_pad * 4
    vmem_limit = int(min(64 * 1024 * 1024,
                         max(16 * 1024 * 1024,
                             2 * (x_blk + o_blk) + w_bytes + (4 << 20))))

    out = pl.pallas_call(
        kernel,
        out_shape=jax.ShapeDtypeStruct((B_pad, H_pad), jnp.float32),
        grid_spec=pltpu.PrefetchScalarGridSpec(
            num_scalar_prefetch=0,
            grid=grid,
            in_specs=[
                pl.BlockSpec((TB, L_pad + 2, C_pad), lambda i: (i, 0, 0)),
                pl.BlockSpec((3, C_pad, H_pad), lambda i: (0, 0, 0)),
                pl.BlockSpec((1, H_pad), lambda i: (0, 0)),
            ],
            out_specs=pl.BlockSpec((TB, H_pad), lambda i: (i, 0)),
        ),
        compiler_params=pltpu.CompilerParams(
            dimension_semantics=("parallel",),
            vmem_limit_bytes=vmem_limit,
        ),
    )(x_halo, w_full, b_row)

    return out[:B, :H]


def reference_forward(word, pos1, pos2, params):
    """Pure-JAX f32 reference of the same forward pass (for verification)."""
    x = jnp.concatenate(
        [params["word_emb"][word], params["pos1_emb"][pos1],
         params["pos2_emb"][pos2]], axis=-1).astype(jnp.float32)  # (B, L, C_in)
    B, L, C_in = x.shape
    H = params["conv_w"].shape[0]
    x_pad = jnp.pad(x, ((0, 0), (1, 1), (0, 0)))
    w_taps = jnp.transpose(params["conv_w"], (2, 1, 0))           # (3, C_in, H)
    conv = jnp.zeros((B, L, H), jnp.float32)
    for k in range(3):
        conv += jnp.einsum("blc,ch->blh", x_pad[:, k:k + L, :], w_taps[k])
    conv = jax.nn.relu(conv + params["conv_b"].reshape(1, 1, H))
    return jnp.max(conv, axis=1)


def _run_case(key, *, B, L, V, Dw, Dp, H, target_m):
    C_in = Dw + 2 * Dp
    k_we, k_p1, k_p2, k_cw, k_cb, k_w, k_i1, k_i2 = jax.random.split(key, 8)

    params = {
        "word_emb": jax.random.normal(k_we, (V, Dw), jnp.float32) * 0.1,
        # padding_idx=0 semantics of nn.Embedding: zero out row 0
        "pos1_emb": jax.random.normal(k_p1, (2 * L, Dp), jnp.float32).at[0].set(0.0) * 0.1,
        "pos2_emb": jax.random.normal(k_p2, (2 * L, Dp), jnp.float32).at[0].set(0.0) * 0.1,
        # PyTorch Conv1d weight layout: (out_channels, in_channels, kernel_size)
        "conv_w": jax.random.normal(k_cw, (H, C_in, 3), jnp.float32) * 0.1,
        "conv_b": jax.random.normal(k_cb, (H,), jnp.float32) * 0.1,
    }
    word = jax.random.randint(k_w, (B, L), 0, V, dtype=jnp.int32)
    pos1 = jax.random.randint(k_i1, (B, L), 0, 2 * L, dtype=jnp.int32)
    pos2 = jax.random.randint(k_i2, (B, L), 0, 2 * L, dtype=jnp.int32)

    fwd = jax.jit(functools.partial(cnn_sentence_encoder, target_m=target_m))
    out = jax.block_until_ready(fwd(word, pos1, pos2, params))

    ref = reference_forward(word, pos1, pos2, params)
    assert out.shape == (B, H), out.shape
    assert bool(jnp.all(jnp.isfinite(out))), "non-finite output"
    # bf16 MXU inputs with f32 accumulation vs f32 reference -> small quant noise
    assert jnp.allclose(out, ref, atol=1e-2, rtol=1e-2), f"mismatch (B={B}, L={L})"


if __name__ == "__main__":
    key = jax.random.PRNGKey(0)
    k1, k2, k3 = jax.random.split(key, 3)

    # Small, module-consistent shapes.
    _run_case(k1, B=2, L=16, V=20, Dw=32, Dp=4, H=32, target_m=2048)
    # L % 8 != 0 -> exercises the poison-lane sequence mask + batch padding.
    _run_case(k2, B=5, L=13, V=20, Dw=32, Dp=4, H=32, target_m=2048)
    # Multiple grid steps (v7x two-TensorCore sharding path) + multiple
    # in-kernel chunks (fori_loop path with dynamic chunk offsets).
    _run_case(k3, B=40, L=13, V=20, Dw=32, Dp=4, H=32, target_m=1024)

    print("KERNEL_OK")
</pallas_src>

<mosaic_0001>
module attributes {stable_mosaic.version = 11 : i64} {
  func.func @kernel(%arg0: i32, %arg1: memref<16x18x128xbf16, #tpu.memory_space<vmem>>, %arg2: memref<3x128x128xbf16, #tpu.memory_space<vmem>>, %arg3: memref<1x128xf32, #tpu.memory_space<vmem>>, %arg4: memref<16x128xf32, #tpu.memory_space<vmem>>) attributes {dimension_semantics = [#tpu.dimension_semantics<parallel>], iteration_bounds = array<i64: 1>, scalar_prefetch = 0 : i64, scratch_operands = 0 : i64, tpu.core_type = #tpu.core_type<tc>, window_params = [{transform_indices = @transform_0, window_bounds = array<i64: 16, 18, 128>}, {pipeline_mode = #tpu.pipeline_mode<synchronous>, transform_indices = @transform_1, window_bounds = array<i64: 3, 128, 128>}, {pipeline_mode = #tpu.pipeline_mode<synchronous>, transform_indices = @transform_2, window_bounds = array<i64: 1, 128>}, {transform_indices = @transform_3, window_bounds = array<i64: 16, 128>}]} {
    %c0 = arith.constant 0 : index
    %c0_0 = arith.constant 0 : index
    %0 = vector.load %arg3[%c0, %c0_0] : memref<1x128xf32, #tpu.memory_space<vmem>>, vector<1x128xf32>
    %c0_1 = arith.constant 0 : index
    %c0_2 = arith.constant 0 : index
    %c0_3 = arith.constant 0 : index
    %1 = vector.load %arg1[%c0_1, %c0_2, %c0_3] : memref<16x18x128xbf16, #tpu.memory_space<vmem>>, vector<16x18x128xbf16>
    %2 = vector.extract_strided_slice %1 {offsets = [0, 0, 0], sizes = [16, 16, 128], strides = [1, 1, 1]} : vector<16x18x128xbf16> to vector<16x16x128xbf16>
    %3 = vector.shape_cast %2 : vector<16x16x128xbf16> to vector<256x128xbf16>
    %c0_4 = arith.constant 0 : index
    %c0_5 = arith.constant 0 : index
    %c0_6 = arith.constant 0 : index
    %4 = vector.load %arg2[%c0_4, %c0_5, %c0_6] : memref<3x128x128xbf16, #tpu.memory_space<vmem>>, vector<1x128x128xbf16>
    %5 = vector.shape_cast %4 : vector<1x128x128xbf16> to vector<128x128xbf16>
    %cst = arith.constant dense<0.000000e+00> : vector<256x128xf32>
    %6 = tpu.matmul %3, %5, %cst {dimension_numbers = #tpu.dot_dimension_numbers<[1], [0], [0], [1], [0, 0, 1, 1], [], []>} : vector<256x128xbf16>, vector<128x128xbf16>, vector<256x128xf32> -> vector<256x128xf32>
    %7 = vector.extract_strided_slice %1 {offsets = [0, 1, 0], sizes = [16, 16, 128], strides = [1, 1, 1]} : vector<16x18x128xbf16> to vector<16x16x128xbf16>
    %8 = vector.shape_cast %7 : vector<16x16x128xbf16> to vector<256x128xbf16>
    %c1 = arith.constant 1 : index
    %c0_7 = arith.constant 0 : index
    %c0_8 = arith.constant 0 : index
    %9 = vector.load %arg2[%c1, %c0_7, %c0_8] : memref<3x128x128xbf16, #tpu.memory_space<vmem>>, vector<1x128x128xbf16>
    %10 = vector.shape_cast %9 : vector<1x128x128xbf16> to vector<128x128xbf16>
    %cst_9 = arith.constant dense<0.000000e+00> : vector<256x128xf32>
    %11 = tpu.matmul %8, %10, %cst_9 {dimension_numbers = #tpu.dot_dimension_numbers<[1], [0], [0], [1], [0, 0, 1, 1], [], []>} : vector<256x128xbf16>, vector<128x128xbf16>, vector<256x128xf32> -> vector<256x128xf32>
    %12 = arith.addf %6, %11 : vector<256x128xf32>
    %13 = vector.extract_strided_slice %1 {offsets = [0, 2, 0], sizes = [16, 16, 128], strides = [1, 1, 1]} : vector<16x18x128xbf16> to vector<16x16x128xbf16>
    %14 = vector.shape_cast %13 : vector<16x16x128xbf16> to vector<256x128xbf16>
    %c2 = arith.constant 2 : index
    %c0_10 = arith.constant 0 : index
    %c0_11 = arith.constant 0 : index
    %15 = vector.load %arg2[%c2, %c0_10, %c0_11] : memref<3x128x128xbf16, #tpu.memory_space<vmem>>, vector<1x128x128xbf16>
    %16 = vector.shape_cast %15 : vector<1x128x128xbf16> to vector<128x128xbf16>
    %cst_12 = arith.constant dense<0.000000e+00> : vector<256x128xf32>
    %17 = tpu.matmul %14, %16, %cst_12 {dimension_numbers = #tpu.dot_dimension_numbers<[1], [0], [0], [1], [0, 0, 1, 1], [], []>} : vector<256x128xbf16>, vector<128x128xbf16>, vector<256x128xf32> -> vector<256x128xf32>
    %18 = arith.addf %12, %17 : vector<256x128xf32>
    %19 = vector.shape_cast %18 : vector<256x128xf32> to vector<16x16x128xf32>
    %cst_13 = arith.constant dense<0xFF800000> : vector<16x128xf32>
    %20 = vector.multi_reduction <maximumf>, %19, %cst_13 [1] : vector<16x16x128xf32> to vector<16x128xf32>
    %21 = vector.broadcast %0 : vector<1x128xf32> to vector<16x128xf32>
    %22 = arith.addf %20, %21 : vector<16x128xf32>
    %cst_14 = arith.constant 0.000000e+00 : f32
    %23 = vector.broadcast %cst_14 : f32 to vector<16x128xf32>
    %24 = arith.maximumf %22, %23 : vector<16x128xf32>
    %c0_15 = arith.constant 0 : index
    %c0_16 = arith.constant 0 : index
    %25 = vector.load %arg4[%c0_15, %c0_16] : memref<16x128xf32, #tpu.memory_space<vmem>>, vector<16x128xf32>
    tpu.vector_store %arg4[%c0_15, %c0_16], %24 {strides = array<i32>} : memref<16x128xf32, #tpu.memory_space<vmem>>, vector<16x128xf32>,
    return
  }
  func.func @transform_0(%arg0: i32) -> (i32, i32, i32) {
    %c0_i32 = arith.constant 0 : i32
    %c0_i32_0 = arith.constant 0 : i32
    %c0_i32_1 = arith.constant 0 : i32
    return %arg0, %c0_i32, %c0_i32_0 : i32, i32, i32
  }
  func.func @transform_1(%arg0: i32) -> (i32, i32, i32) {
    %c0_i32 = arith.constant 0 : i32
    %c0_i32_0 = arith.constant 0 : i32
    %c0_i32_1 = arith.constant 0 : i32
    %c0_i32_2 = arith.constant 0 : i32
    return %c0_i32, %c0_i32_0, %c0_i32_1 : i32, i32, i32
  }
  func.func @transform_2(%arg0: i32) -> (i32, i32) {
    %c0_i32 = arith.constant 0 : i32
    %c0_i32_0 = arith.constant 0 : i32
    %c0_i32_1 = arith.constant 0 : i32
    return %c0_i32, %c0_i32_0 : i32, i32
  }
  func.func @transform_3(%arg0: i32) -> (i32, i32) {
    %c0_i32 = arith.constant 0 : i32
    %c0_i32_0 = arith.constant 0 : i32
    return %arg0, %c0_i32 : i32, i32
  }
}

</mosaic_0001>

<bundles_post_ra>
// kernel: cnn_sentence_encoder.1
= control target key start
LH: loop header
LB: loop body
LE: loop exit
PB: predicated region body
PF: predicated region fallthrough
CT: control target
= control target key end

     0   :  { %vm80_vm0 = vsmask.f32 3328  ;;  %vm81_vm1 = vsmask.f32 7440  ;;  %vm1078_vm3 = vcmask 1042432   ;;  %vm1079_vm4 = vcmask 1046532   ;;  %s2927_s1 = inlined_call_operand.vmem [shape: bf16[3,128,128], index: 1, kind: input, shape index: {}]   ;;  %s2928_s0 = inlined_call_operand.vmem [shape: bf16[16,18,128], index: 0, kind: input, shape index: {}]   ;;  %s2929_s2 = inlined_call_operand.vmem [shape: f32[1,128], index: 2, kind: input, shape index: {}]   ;;  %s2930_s3 = inlined_call_operand.vmem [shape: f32[16,128], index: 3, kind: output, shape index: {}]  }
   0x1   :  { %v2141_v0 = vld [vmem:[%s2927_s1 + $0x40] sm:$0xff]   ;;  %v2143_v2 = vld [vmem:[%s2927_s1 + $0x48] sm:$0xff]   ;;  %v2145_v4 = vld [vmem:[%s2927_s1 + $0x50] sm:$0xff]   ;;  %vm1682_vm6 = vcmask 1041409   ;;  %vm1685_vm7 = vcmask 1042434   ;;  %vm1688_vm8 = vcmask 1043459  }
   0x2   :  { %v2207_v1 = vld [vmem:[%s2927_s1] sm:$0xff]   ;;  %1917 = vmatprep.subr.bf16.mxu1 %v2141_v0  ;;  %v2216_v3 = vld [vmem:[%s2927_s1 + $0x8] sm:$0xff]   ;;  %v2226_v5 = vld [vmem:[%s2927_s1 + $0x10] sm:$0xff]   ;;  %vm1691_vm9 = vcmask 1044484   ;;  %vm1694_vm10 = vcmask 1045509   ;;  %vm1697_vm11 = vcmask 1046534  }
   0x3   :  { %1965 = vmatprep.subr.bf16.mxu0 %v2207_v1  ;;  %1918 = vmatpush3.bf16.msra.mxu1 %v2141_v0  ;;  %v2147_v6 = vld [vmem:[%s2927_s1 + $0x58] sm:$0xff]   ;;  %v2149_v8 = vld [vmem:[%s2927_s1 + $0x60] sm:$0xff]   ;;  %v2151_v10 = vld [vmem:[%s2927_s1 + $0x68] sm:$0xff]   ;;  %vm1700_vm12 = vcmask 1047559  }
   0x4   :  { %1966 = vmatpush3.bf16.msra.mxu0 %v2207_v1  ;;  %1919 = vmatprep.subr.bf16.mxu1 %v2143_v2  ;;  %v2236_v7 = vld [vmem:[%s2927_s1 + $0x18] sm:$0xff]   ;;  %v2246_v9 = vld [vmem:[%s2927_s1 + $0x20] sm:$0xff]   ;;  %v2254_v11 = vld [vmem:[%s2927_s1 + $0x28] sm:$0xff]  }
   0x5   :  { %1967 = vmatprep.subr.bf16.mxu0 %v2216_v3  ;;  %v2260_v12 = vld [vmem:[%s2928_s0] sm:$0xf]  ;;  %v2265_v13 = vld [vmem:[%s2928_s0 + $0x4] sm:$0xf]  ;;  %v2270_v14 = vld [vmem:[%s2928_s0 + $0x8] sm:$0x1] }
   0x6   :  { %v84_v15 = vshrl.u32 %v2260_v12, 16  ;;  %v87_v16 = vshll.u32 %v2260_v12, 16  ;;  %v93_v17 = vshll.u32 %v2265_v13, 16  ;;  %v97_v18 = vshrl.u32 %v2265_v13, 16  ;;  %v2280_v19 = vld [vmem:[%s2928_s0 + $0xc] sm:$0xf]  ;;  %vm2316_vm2 = vmor %vm80_vm0, %vm81_vm1 }
   0x7   :  { %1920 = vmatpush3.bf16.msra.mxu1 %v2143_v2  ;;  %v2153_v20 = vld [vmem:[%s2927_s1 + $0x70] sm:$0xff]   ;;  %v103_v21 = vshll.u32 %v2270_v14, 16  ;;  %v1086_v22 = vrot.slane %v2270_v14, 5  ;;  %v1764_v23 = vcombine.low %v2260_v12, %v2265_v13  ;;  %v108_v31 = vshrl.u32 %v2280_v19, 16  ;;  %v2155_v39 = vld [vmem:[%s2927_s1 + $0x78] sm:$0xff]   ;;  %vm2558_vm5 = vmor %vm1078_vm3, %vm1079_vm4 }
   0x8   :  { %1968 = vmatpush3.bf16.msra.mxu0 %v2216_v3  ;;  %1921 = vmatprep.subr.bf16.mxu1 %v2145_v4  ;;  %v2292_v24 = vld [vmem:[%s2928_s0 + $0x10] sm:$0xf]  ;;  %v2297_v25 = vld [vmem:[%s2928_s0 + $0x14] sm:$0x1]  ;;  %v86_v26 = vrot.slane %v84_v15, 4  ;;  %v89_v27 = vrot.slane %v87_v16, 5 }
   0x9   :  { %1969 = vmatprep.subr.bf16.mxu0 %v2226_v5  ;;  %v95_v28 = vrot.slane %v93_v17, 5  ;;  %v99_v29 = vrot.slane %v97_v18, 4  ;;  %v105_v30 = vrot.slane %v103_v21, 5  ;;  %v111_v32 = vshll.u32 %v2280_v19, 16  ;;  %v2307_v34 = vld [vmem:[%s2927_s1 + $0x30] sm:$0xff]   ;;  %1981 = vmatprep.mubr.bf16.mxu0 %v1764_v23  ;;  %v2345_v56 = vld [vmem:[%s2927_s1 + $0x38] sm:$0xff]  }
   0xa   :  { %v117_v33 = vshll.u32 %v2292_v24, 16  ;;  %v90_v35 = vor.u32 %v89_v27, %v86_v26  ;;  %v121_v37 = vshrl.u32 %v2292_v24, 16  ;;  %v127_v38 = vshll.u32 %v2297_v25, 16  ;;  %v2324_v49 = vld [vmem:[%s2928_s0 + $0x18] sm:$0xf]  ;;  %v2159_v26 = vld [vmem:[%s2927_s1 + $0x80] sm:$0xff]  }
   0xb   :  { %1922 = vmatpush3.bf16.msra.mxu1 %v2145_v4  ;;  %v100_v36 = vor.u32 %v99_v29, %v95_v28  ;;  %v110_v41 = vrot.slane %v108_v31, 4  ;;  %v113_v42 = vrot.slane %v111_v32, 5  ;;  %v1093_v44 = vrot.slane %v2297_v25, 5  ;;  %v2332_v52 = vld [vmem:[%s2928_s0 + $0x1c] sm:$0xf] }
   0xc   :  { %1970 = vmatpush3.bf16.msra.mxu0 %v2226_v5  ;;  %1923 = vmatprep.subr.bf16.mxu1 %v2147_v6  ;;  %v119_v43 = vrot.slane %v117_v33, 5  ;;  %v91_v45 = vrot.slane %v90_v35, 4  ;;  %v123_v47 = vrot.slane %v121_v37, 4  ;;  %v129_v48 = vrot.slane %v127_v38, 5  ;;  %v2337_v53 = vld [vmem:[%s2928_s0 + $0x20] sm:$0x1] }
   0xd   :  { %1971 = vmatprep.subr.bf16.mxu0 %v2236_v7  ;;  %v101_v46 = vrot.slane %v100_v36, 4  ;;  %v114_v50 = vor.u32 %v113_v42, %v110_v41  ;;  %v1765_v51 = vcombine.low %v2280_v19, %v2292_v24  ;;  %v132_v54 = vshrl.u32 %v2324_v49, 16  ;;  %v2355_v61 = vld [vmem:[%s2928_s0 + $0x24] sm:$0xf]  ;;  %v2360_v62 = vld [vmem:[%s2928_s0 + $0x28] sm:$0xf] }
   0xe   :  { %v135_v55 = vshll.u32 %v2324_v49, 16  ;;  %v96_v57 = vsel %vm2316_vm2, %v91_v45, %v95_v28  ;;  %v124_v59 = vor.u32 %v123_v47, %v119_v43  ;;  %v141_v60 = vshll.u32 %v2332_v52, 16  ;;  %v2386_v35 = vld [vmem:[%s2928_s0 + $0x30] sm:$0xf]  ;;  %v2393_v42 = vld [vmem:[%s2928_s0 + $0x34] sm:$0xf] }
   0xf   :  { %1924 = vmatpush3.bf16.msra.mxu1 %v2147_v6  ;;  %v106_v58 = vsel %vm2316_vm2, %v101_v46, %v105_v30  ;;  %v115_v0 = vrot.slane %v114_v50, 4  ;;  %v134_v2 = vrot.slane %v132_v54, 4  ;;  %v2365_v6 = vld [vmem:[%s2928_s0 + $0x2c] sm:$0x1]  ;;  %v145_v15 = vshrl.u32 %v2332_v52, 16 }
  0x10   :  { %1972 = vmatpush3.bf16.msra.mxu0 %v2236_v7  ;;  %1925 = vmatprep.subr.bf16.mxu1 %v2149_v8  ;;  %v1740_v63 = vcombine.low %v96_v57, %v106_v58  ;;  %v137_v4 = vrot.slane %v135_v55, 5  ;;  %v151_v16 = vshll.u32 %v2337_v53, 16  ;;  %v1766_v21 = vcombine.low %v2324_v49, %v2332_v52  ;;  %v2404_v46 = vld [vmem:[%s2928_s0 + $0x38] sm:$0x1]  ;;  %v2413_v58 = vld [vmem:[%s2928_s0 + $0x3c] sm:$0xf] }
  0x11   :  { %1973 = vmatprep.subr.bf16.mxu0 %v2246_v9  ;;  %v120_v17 = vsel %vm2316_vm2, %v115_v0, %v119_v43  ;;  %v156_v23 = vshrl.u32 %v2355_v61, 16  ;;  %v147_v27 = vrot.slane %v145_v15, 4  ;;  %v159_v29 = vshll.u32 %v2355_v61, 16  ;;  %v2600_v14 = vld [vmem:[%s2928_s0 + $0x78] sm:$0xf] }
  0x12   :  { %v138_v18 = vor.u32 %v137_v4, %v134_v2  ;;  %1933 = vmatprep.mubr.bf16.mxu1 %v1740_v63  ;;  %v153_v28 = vrot.slane %v151_v16, 5  ;;  %v165_v33 = vshll.u32 %v2360_v62, 16  ;;  %v169_v38 = vshrl.u32 %v2360_v62, 16  ;;  %v2421_v2 = vld [vmem:[%s2928_s0 + $0x40] sm:$0xf] }
  0x13   :  { %1926 = vmatpush3.bf16.msra.mxu1 %v2149_v8  ;;  %v125_v8 = vrot.slane %v124_v59, 4  ;;  %v158_v32 = vrot.slane %v156_v23, 4  ;;  %v161_v37 = vrot.slane %v159_v29, 5  ;;  %v175_v41 = vshll.u32 %v2365_v6, 16  ;;  %v2426_v4 = vld [vmem:[%s2928_s0 + $0x44] sm:$0x1] }
  0x14   :  { %1974 = vmatpush3.bf16.msra.mxu0 %v2246_v9  ;;  %1927 = vmatprep.subr.bf16.mxu1 %v2151_v10  ;;  %v139_v31 = vrot.slane %v138_v18, 4  ;;  %v167_v45 = vrot.slane %v165_v33, 5  ;;  %v180_v47 = vshrl.u32 %v2386_v35, 16  ;;  %v171_v55 = vrot.slane %v169_v38, 4 }
  0x15   :  { %1975 = vmatprep.subr.bf16.mxu0 %v2254_v11  ;;  %v162_v54 = vor.u32 %v161_v37, %v158_v32  ;;  %v177_v57 = vrot.slane %v175_v41, 5  ;;  %v189_v63 = vshll.u32 %v2393_v42, 16  ;;  %v193_v0 = vshrl.u32 %v2393_v42, 16  ;;  %v2448_v32 = vld [vmem:[%s2928_s0 + $0x48] sm:$0xf] }
  0x16   :  { %v182_v59 = vrot.slane %v180_v47, 4  ;;  %v172_v15 = vor.u32 %v171_v55, %v167_v45  ;;  %v199_v16 = vshll.u32 %v2404_v46, 16  ;;  %v217_v37 = vshrl.u32 %v2421_v2, 16  ;;  %v2459_v41 = vld [vmem:[%s2928_s0 + $0x4c] sm:$0xf] }
  0x17   :  { %1928 = vmatpush3.bf16.msra.mxu1 %v2151_v10  ;;  %v143_v10 = vrot.slane %v141_v60, 5  ;;  %v183_v60 = vshll.u32 %v2386_v35, 16  ;;  %v191_v23 = vrot.slane %v189_v63, 5  ;;  %v223_v38 = vshll.u32 %v2426_v4, 16 }
  0x18   :  { %1976 = vmatpush3.bf16.msra.mxu0 %v2254_v11  ;;  %1929 = vmatprep.subr.bf16.mxu1 %v2153_v20  ;;  %v1097_v25 = vrot.slane %v2332_v52, 5 }
  0x19   :  { %1977 = vmatprep.subr.bf16.mxu0 %v2307_v34  ;;  %v148_v36 = vor.u32 %v147_v27, %v143_v10  ;;  %v144_v43 = vsel %vm2316_vm2, %v139_v31, %v143_v10  ;;  %v163_v10 = vrot.slane %v162_v54, 4  ;;  %v185_v18 = vrot.slane %v183_v60, 5  ;;  %v2468_v54 = vld [vmem:[%s2928_s0 + $0x50] sm:$0x1]  ;;  %v2473_v60 = vld [vmem:[%s2928_s0 + $0x54] sm:$0xf] }
  0x1a   :  { %v207_v31 = vshll.u32 %v2413_v58, 16 }
  0x1b   :  { %1930 = vmatpush3.bf16.msra.mxu1 %v2153_v20  ;;  %v130_v20 = vsel %vm2316_vm2, %v125_v8, %v129_v48  ;;  %v2160_v48 = vld [vmem:[%s2927_s1 + $0x88] sm:$0xff]   ;;  %v149_v50 = vrot.slane %v148_v36, 4  ;;  %v168_v27 = vsel %vm2316_vm2, %v163_v10, %v167_v45  ;;  %v213_v36 = vshll.u32 %v2421_v2, 16  ;;  %v2164_v45 = vld [vmem:[%s2927_s1 + $0x98] sm:$0xff]  }
  0x1c   :  { %1978 = vmatpush3.bf16.msra.mxu0 %v2307_v34  ;;  %1931 = vmatprep.subr.bf16.mxu1 %v2155_v39  ;;  %v1741_v30 = vcombine.low %v120_v17, %v130_v20  ;;  %v195_v20 = vrot.slane %v193_v0, 4  ;;  %v209_v55 = vrot.slane %v207_v31, 5  ;;  %v228_v10 = vshrl.u32 %v2448_v32, 16 }
  0x1d   :  { %1979 = vmatprep.subr.bf16.mxu0 %v2345_v56  ;;  %v154_v8 = vsel %vm2316_vm2, %v149_v50, %v153_v28  ;;  %v201_v28 = vrot.slane %v199_v16, 5 }
  0x1e   :  { %v1742_v17 = vcombine.low %v144_v43, %v154_v8  ;;  %v196_v29 = vor.u32 %v195_v20, %v191_v23  ;;  %v1769_v8 = vcombine.low %v2413_v58, %v2421_v2  ;;  %v237_v20 = vshll.u32 %v2459_v41, 16 }
  0x1f   :  { %1932 = vmatpush3.bf16.msra.mxu1 %v2155_v39  ;;  %v1767_v39 = vcombine.low %v2355_v61, %v2360_v62 }
  0x20   :  { %1980 = vmatpush3.bf16.msra.mxu0 %v2345_v56  ;;  %2061 = vmatprep.subr.bf16.mxu1 %v2207_v1  ;;  %v197_v50 = vrot.slane %v196_v29, 4  ;;  %v239_v29 = vrot.slane %v237_v20, 5 }
  0x21   :  { %2013 = vmatprep.subr.bf16.mxu0 %v2159_v26 }
  0x22   :  { %1934 = vmatmul.mubr.bf16.vlgmr.msra.gmra.mrb[0].mxu1 %v1741_v30  ;;  %v204_v30 = vshrl.u32 %v2413_v58, 16  ;;  %v202_v0 = vsel %vm2316_vm2, %v197_v50, %v201_v28  ;;  %v2516_v50 = vld [vmem:[%s2928_s0 + $0x60] sm:$0xf] }
  0x23   :  { %1982 = vmatmul.mubr.bf16.vlgmr.msra.gmra.mrb[0].mxu0 %v1765_v51  ;;  %2069 = vmatpush3.bf16.msra.mxu1 %v2207_v1  ;;  %v173_v51 = vrot.slane %v172_v15, 4  ;;  %v2163_v1 = vld [vmem:[%s2927_s1 + $0x90] sm:$0xff]  }
  0x24   :  { %2014 = vmatpush3.bf16.msra.mxu0 %v2159_v26  ;;  %1985 = vmatprep.mubr.bf16.mxu0 %v1766_v21  ;;  %v1768_v26 = vcombine.low %v2386_v35, %v2393_v42  ;;  %v186_v21 = vor.u32 %v185_v18, %v182_v59  ;;  %v219_v59 = vrot.slane %v217_v37, 4  ;;  %v231_v18 = vshll.u32 %v2448_v32, 16 }
  0x25   :  { %2015 = vmatprep.subr.bf16.mxu0 %v2160_v48  ;;  %2062 = vmatprep.subr.bf16.mxu1 %v2216_v3  ;;  %v178_v33 = vsel %vm2316_vm2, %v173_v51, %v177_v57  ;;  %v215_v57 = vrot.slane %v213_v36, 5  ;;  %v247_v51 = vshll.u32 %v2468_v54, 16  ;;  %v252_v36 = vshrl.u32 %v2473_v60, 16 }
  0x26   :  { %1937 = vmatprep.mubr.bf16.mxu1 %v1742_v17  ;;  %v1743_v43 = vcombine.low %v168_v27, %v178_v33  ;;  %v187_v47 = vrot.slane %v186_v21, 4  ;;  %v241_v27 = vshrl.u32 %v2459_v41, 16  ;;  %v233_v21 = vrot.slane %v231_v18, 5  ;;  %v2503_v33 = vld [vmem:[%s2928_s0 + $0x5c] sm:$0x1] }
  0x27   :  { %2070 = vmatpush3.bf16.msra.mxu1 %v2216_v3  ;;  %v206_v3 = vrot.slane %v204_v30, 4  ;;  %v220_v17 = vor.u32 %v219_v59, %v215_v57  ;;  %v249_v31 = vrot.slane %v247_v51, 5  ;;  %v254_v59 = vrot.slane %v252_v36, 4 }
  0x28   :  { %2016 = vmatpush3.bf16.msra.mxu0 %v2160_v48  ;;  %2063 = vmatprep.subr.bf16.mxu1 %v2226_v5  ;;  %v225_v48 = vrot.slane %v223_v38, 5  ;;  %v192_v63 = vsel %vm2316_vm2, %v187_v47, %v191_v23  ;;  %v230_v23 = vrot.slane %v228_v10, 4  ;;  %v243_v30 = vrot.slane %v241_v27, 4 }
  0x29   :  { %2017 = vmatprep.subr.bf16.mxu0 %v2163_v1  ;;  %v1744_v15 = vcombine.low %v192_v63, %v202_v0  ;;  %v210_v16 = vor.u32 %v209_v55, %v206_v3  ;;  %v221_v28 = vrot.slane %v220_v17, 4  ;;  %v255_v47 = vshll.u32 %v2473_v60, 16  ;;  %v2168_v55 = vld [vmem:[%s2927_s1 + $0xa8] sm:$0xff]  }
  0x2a   :  { %1938 = vmatmul.mubr.bf16.gmra.mrb[4].mxu1 %v1743_v43  ;;  %v234_v43 = vor.u32 %v233_v21, %v230_v23  ;;  %v271_v10 = vshll.u32 %v2503_v33, 16  ;;  %v276_v18 = vshrl.u32 %v2516_v50, 16 }
  0x2b   :  { %1986 = vmatmul.mubr.bf16.gmra.mrb[4].mxu0 %v1767_v39  ;;  %2071 = vmatpush3.bf16.msra.mxu1 %v2226_v5  ;;  %v211_v39 = vrot.slane %v210_v16, 4  ;;  %v2167_v5 = vld [vmem:[%s2927_s1 + $0xa0] sm:$0xff]   ;;  %v226_v38 = vsel %vm2316_vm2, %v221_v28, %v225_v48 }
  0x2c   :  { %2018 = vmatpush3.bf16.msra.mxu0 %v2163_v1  ;;  %1989 = vmatprep.mubr.bf16.mxu0 %v1768_v26  ;;  %v1770_v1 = vcombine.low %v2448_v32, %v2459_v41  ;;  %v2498_v26 = vld [vmem:[%s2928_s0 + $0x58] sm:$0xf]  ;;  %v235_v63 = vrot.slane %v234_v43, 4  ;;  %v273_v51 = vrot.slane %v271_v10, 5  ;;  %v278_v21 = vrot.slane %v276_v18, 4 }
  0x2d   :  { %2019 = vmatprep.subr.bf16.mxu0 %v2164_v45  ;;  %1941 = vmatprep.mubr.bf16.mxu1 %v1744_v15  ;;  %v216_v37 = vsel %vm2316_vm2, %v211_v39, %v215_v57  ;;  %v244_v57 = vor.u32 %v243_v30, %v239_v29  ;;  %v261_v48 = vshll.u32 %v2498_v26, 16  ;;  %v265_v0 = vshrl.u32 %v2498_v26, 16  ;;  %v2538_v39 = vld [vmem:[%s2928_s0 + $0x68] sm:$0x1]  ;;  %v2570_v10 = vld [vmem:[%s2928_s0 + $0x70] sm:$0xf] }
  0x2e   :  { %2064 = vmatprep.subr.bf16.mxu1 %v2236_v7  ;;  %v1745_v3 = vcombine.low %v216_v37, %v226_v38  ;;  %v1771_v17 = vcombine.low %v2473_v60, %v2498_v26  ;;  %v240_v23 = vsel %vm2316_vm2, %v235_v63, %v239_v29  ;;  %v2171_v38 = vld [vmem:[%s2927_s1 + $0xb0] sm:$0xff]   ;;  %v295_v43 = vshll.u32 %v2538_v39, 16 }
  0x2f   :  { %2072 = vmatpush3.bf16.msra.mxu1 %v2236_v7  ;;  %v257_v7 = vrot.slane %v255_v47, 5  ;;  %v245_v15 = vrot.slane %v244_v57, 4  ;;  %v263_v16 = vrot.slane %v261_v48, 5  ;;  %v267_v27 = vrot.slane %v265_v0, 4 }
  0x30   :  { %2020 = vmatpush3.bf16.msra.mxu0 %v2164_v45  ;;  %2065 = vmatprep.subr.bf16.mxu1 %v2246_v9  ;;  %v2528_v45 = vld [vmem:[%s2928_s0 + $0x64] sm:$0xf]  ;;  %v1083_v63 = vrot.slane %v2265_v13, 5  ;;  %v297_v0 = vrot.slane %v295_v43, 5 }
  0x31   :  { %2021 = vmatprep.subr.bf16.mxu0 %v2167_v5  ;;  %v258_v20 = vor.u32 %v257_v7, %v254_v59  ;;  %v250_v28 = vsel %vm2316_vm2, %v245_v15, %v249_v31  ;;  %v285_v29 = vshll.u32 %v2528_v45, 16  ;;  %v268_v37 = vor.u32 %v267_v27, %v263_v16 }
  0x32   :  { %1942 = vmatmul.mubr.bf16.gmra.mrb[8].mxu1 %v1745_v3  ;;  %v1746_v30 = vcombine.low %v240_v23, %v250_v28  ;;  %v1788_v3 = vrot.slane %v2260_v12, 9  ;;  %v1085_v18 = vrot.slane %v1083_v63, 4  ;;  %v2585_v23 = vld [vmem:[%s2928_s0 + $0x74] sm:$0x1] }
  0x33   :  { %1990 = vmatmul.mubr.bf16.gmra.mrb[8].mxu0 %v1769_v8  ;;  %2073 = vmatpush3.bf16.msra.mxu1 %v2246_v9  ;;  %v279_v8 = vshll.u32 %v2516_v50, 16  ;;  %v259_v36 = vrot.slane %v258_v20, 4  ;;  %v289_v9 = vshrl.u32 %v2528_v45, 16  ;;  %v287_v31 = vrot.slane %v285_v29, 5 }
  0x34   :  { %2022 = vmatpush3.bf16.msra.mxu0 %v2167_v5  ;;  %1993 = vmatprep.mubr.bf16.mxu0 %v1770_v1  ;;  %v2552_v5 = vld [vmem:[%s2928_s0 + $0x6c] sm:$0xf]  ;;  %v269_v59 = vrot.slane %v268_v37, 4  ;;  %v309_v29 = vshll.u32 %v2570_v10, 16 }
  0x35   :  { %2023 = vmatprep.subr.bf16.mxu0 %v2168_v55  ;;  %2066 = vmatprep.subr.bf16.mxu1 %v2254_v11  ;;  %v281_v1 = vrot.slane %v279_v8, 5  ;;  %v264_v57 = vsel %vm2316_vm2, %v259_v36, %v263_v16  ;;  %v291_v48 = vrot.slane %v289_v9, 4  ;;  %v300_v12 = vshrl.u32 %v2552_v5, 16 }
  0x36   :  { %1945 = vmatprep.mubr.bf16.mxu1 %v1746_v30  ;;  %v303_v15 = vshll.u32 %v2552_v5, 16  ;;  %v274_v16 = vsel %vm2316_vm2, %v269_v59, %v273_v51  ;;  %v1087_v8 = vsel %vm2558_vm5, %v1085_v18, %v1086_v22  ;;  %v313_v30 = vshrl.u32 %v2570_v10, 16  ;;  %v2605_v22 = vld [vmem:[%s2928_s0 + $0x7c] sm:$0xf] }
  0x37   :  { %2074 = vmatpush3.bf16.msra.mxu1 %v2254_v11  ;;  %v282_v7 = vor.u32 %v281_v1, %v278_v21  ;;  %v2172_v11 = vld [vmem:[%s2927_s1 + $0xb8] sm:$0xff]   ;;  %v292_v13 = vor.u32 %v291_v48, %v287_v31  ;;  %v1747_v20 = vcombine.low %v264_v57, %v274_v16  ;;  %v302_v28 = vrot.slane %v300_v12, 4 }
  0x38   :  { %2024 = vmatpush3.bf16.msra.mxu0 %v2168_v55  ;;  %2067 = vmatprep.subr.bf16.mxu1 %v2307_v34  ;;  %v1084_v55 = vsel %vm2558_vm5, %v1788_v3, %v1083_v63  ;;  %v305_v21 = vrot.slane %v303_v15, 5  ;;  %v315_v1 = vrot.slane %v313_v30, 4  ;;  %v1090_v59 = vrot.slane %v2292_v24, 5  ;;  %v2615_v63 = vld [vmem:[%s2928_s0 + $0x80] sm:$0x1] }
  0x39   :  { %2025 = vmatprep.subr.bf16.mxu0 %v2171_v38  ;;  %v283_v27 = vrot.slane %v282_v7, 4  ;;  %v293_v51 = vrot.slane %v292_v13, 4  ;;  %v1820_v37 = vcombine.low %v1084_v55, %v1087_v8  ;;  %v324_v7 = vshrl.u32 %v2600_v14, 16 }
  0x3a   :  { %1946 = vmatmul.mubr.bf16.gmra.mrb[12].mxu1 %v1747_v20  ;;  %v306_v9 = vor.u32 %v305_v21, %v302_v28  ;;  %v1092_v15 = vrot.slane %v1090_v59, 4  ;;  %v337_v16 = vshrl.u32 %v2605_v22, 16  ;;  %v1790_v28 = vrot.slane %v2324_v49, 9  ;;  %v2635_v21 = vld [vmem:[%s2928_s0 + $0x84] sm:$0xf] }
  0x3b   :  { %1994 = vmatmul.mubr.bf16.gmra.mrb[12].mxu0 %v1771_v17  ;;  %2075 = vmatpush3.bf16.msra.mxu1 %v2307_v34  ;;  %v288_v36 = vsel %vm2316_vm2, %v283_v27, %v287_v31  ;;  %v319_v17 = vshll.u32 %v2585_v23, 16  ;;  %v298_v34 = vsel %vm2316_vm2, %v293_v51, %v297_v0  ;;  %v1789_v31 = vrot.slane %v2280_v19, 9 }
  0x3c   :  { %2026 = vmatpush3.bf16.msra.mxu0 %v2171_v38  ;;  %v311_v38 = vrot.slane %v309_v29, 5  ;;  %2068 = vmatprep.subr.bf16.mxu1 %v2345_v56  ;;  %v1748_v43 = vcombine.low %v288_v36, %v298_v34  ;;  %v307_v3 = vrot.slane %v306_v9, 4  ;;  %v327_v0 = vshll.u32 %v2600_v14, 16  ;;  %v2649_v9 = vld [vmem:[%s2928_s0 + $0x8c] sm:$0x1] }
  0x3d   :  { %2027 = vmatprep.subr.bf16.mxu0 %v2172_v11  ;;  %2029 = vmatprep.mubr.bf16.mxu0 %v1820_v37  ;;  %v321_v57 = vrot.slane %v319_v17, 5  ;;  %v333_v19 = vshll.u32 %v2605_v22, 16  ;;  %v1091_v24 = vsel %vm2558_vm5, %v1789_v31, %v1090_v59  ;;  %v326_v55 = vrot.slane %v324_v7, 4  ;;  %v2665_v7 = vld [vmem:[%s2928_s0 + $0x90] sm:$0xf] }
  0x3e   :  { %v316_v48 = vor.u32 %v315_v1, %v311_v38  ;;  %1949 = vmatprep.mubr.bf16.mxu1 %v1748_v43  ;;  %v312_v12 = vsel %vm2316_vm2, %v307_v3, %v311_v38  ;;  %v329_v18 = vrot.slane %v327_v0, 5  ;;  %v343_v27 = vshll.u32 %v2615_v63, 16 }
  0x3f   :  { %2076 = vmatpush3.bf16.msra.mxu1 %v2345_v56  ;;  %v335_v20 = vrot.slane %v333_v19, 5  ;;  %v1094_v56 = vsel %vm2558_vm5, %v1092_v15, %v1093_v44  ;;  %v2643_v44 = vld [vmem:[%s2928_s0 + $0x88] sm:$0xf]  ;;  %v1100_v37 = vrot.slane %v2337_v53, 5  ;;  %v1098_v52 = vsel %vm2558_vm5, %v1790_v28, %v1097_v25  ;;  %v2672_v15 = vld [vmem:[%s2928_s0 + $0x94] sm:$0xf] }
  0x40   :  { %2028 = vmatpush3.bf16.msra.mxu0 %v2172_v11  ;;  %v317_v13 = vrot.slane %v316_v48, 4  ;;  %v339_v11 = vrot.slane %v337_v16, 4  ;;  %v1821_v8 = vcombine.low %v1091_v24, %v1094_v56  ;;  %v330_v29 = vor.u32 %v329_v18, %v326_v55 }
  0x41   :  { %v345_v49 = vrot.slane %v343_v27, 5  ;;  %v1099_v34 = vrot.slane %v1097_v25, 4  ;;  %v348_v38 = vshrl.u32 %v2635_v21, 16  ;;  %v351_v31 = vshll.u32 %v2635_v21, 16 }
  0x42   :  { %v322_v51 = vsel %vm2316_vm2, %v317_v13, %v321_v57  ;;  %v340_v36 = vor.u32 %v339_v11, %v335_v20  ;;  %v331_v17 = vrot.slane %v330_v29, 4  ;;  %v357_v43 = vshll.u32 %v2643_v44, 16 }
  0x43   :  { %v1749_v30 = vcombine.low %v312_v12, %v322_v51  ;;  %2030 = vmatmul.mubr.bf16.vlgmr.msra.gmra.mrb[0].mxu0 %v1821_v8  ;;  %v361_v53 = vshrl.u32 %v2643_v44, 16  ;;  %v1101_v57 = vsel %vm2558_vm5, %v1099_v34, %v1100_v37  ;;  %v350_v59 = vrot.slane %v348_v38, 4  ;;  %v2681_v51 = vld [vmem:[%s2928_s0 + $0x98] sm:$0x1] }
  0x44   :  { %v341_v1 = vrot.slane %v340_v36, 4  ;;  %v336_v3 = vsel %vm2316_vm2, %v331_v17, %v335_v20  ;;  %v367_v48 = vshll.u32 %v2649_v9, 16  ;;  %v1822_v19 = vcombine.low %v1098_v52, %v1101_v57 }
  0x45   :  { %1950 = vmatmul.mubr.bf16.gmra.mrb[16].mxu1 %v1749_v30  ;;  %v353_v12 = vrot.slane %v351_v31, 5  ;;  %v359_v24 = vrot.slane %v357_v43, 5  ;;  %v363_v13 = vrot.slane %v361_v53, 4  ;;  %v1791_v18 = vrot.slane %v2355_v61, 9  ;;  %v2697_v31 = vld [vmem:[%s2928_s0 + $0x9c] sm:$0xf] }
  0x46   :  { %v346_v0 = vsel %vm2316_vm2, %v341_v1, %v345_v49  ;;  %v369_v55 = vrot.slane %v367_v48, 5  ;;  %2033 = vmatprep.mubr.bf16.mxu0 %v1822_v19  ;;  %v1104_v56 = vrot.slane %v2360_v62, 5  ;;  %v1107_v11 = vrot.slane %v2365_v6, 5 }
  0x47   :  { %v1750_v16 = vcombine.low %v336_v3, %v346_v0  ;;  %v354_v20 = vor.u32 %v353_v12, %v350_v59  ;;  %v372_v27 = vshrl.u32 %v2665_v7, 16  ;;  %v364_v28 = vor.u32 %v363_v13, %v359_v24  ;;  %v2704_v59 = vld [vmem:[%s2928_s0 + $0xa0] sm:$0xf] }
  0x48   :  { %v375_v8 = vshll.u32 %v2665_v7, 16  ;;  %v381_v29 = vshll.u32 %v2672_v15, 16  ;;  %v385_v61 = vshrl.u32 %v2672_v15, 16  ;;  %v1105_v62 = vsel %vm2558_vm5, %v1791_v18, %v1104_v56 }
  0x49   :  { %1953 = vmatprep.mubr.bf16.mxu1 %v1750_v16  ;;  %v355_v25 = vrot.slane %v354_v20, 4  ;;  %v1106_v6 = vrot.slane %v1104_v56, 4  ;;  %v374_v30 = vrot.slane %v372_v27, 4  ;;  %v365_v36 = vrot.slane %v364_v28, 4  ;;  %v2715_v20 = vld [vmem:[%s2928_s0 + $0xa4] sm:$0x1] }
  0x4a   :  { %v377_v49 = vrot.slane %v375_v8, 5  ;;  %v383_v37 = vrot.slane %v381_v29, 5  ;;  %v387_v17 = vrot.slane %v385_v61, 4  ;;  %v391_v38 = vshll.u32 %v2681_v51, 16  ;;  %v2726_v8 = vld [vmem:[%s2928_s0 + $0xa8] sm:$0xf] }
  0x4b   :  { %v360_v52 = vsel %vm2316_vm2, %v355_v25, %v359_v24  ;;  %v1108_v34 = vsel %vm2558_vm5, %v1106_v6, %v1107_v11  ;;  %v1792_v1 = vrot.slane %v2386_v35, 9  ;;  %v370_v43 = vsel %vm2316_vm2, %v365_v36, %v369_v55  ;;  %v2733_v6 = vld [vmem:[%s2928_s0 + $0xac] sm:$0xf] }
  0x4c   :  { %v1823_v53 = vcombine.low %v1105_v62, %v1108_v34  ;;  %v378_v3 = vor.u32 %v377_v49, %v374_v30  ;;  %v388_v57 = vor.u32 %v387_v17, %v383_v37  ;;  %v1751_v48 = vcombine.low %v360_v52, %v370_v43 }
  0x4d   :  { %v393_v0 = vrot.slane %v391_v38, 5  ;;  %v1111_v35 = vrot.slane %v2393_v42, 5  ;;  %v1114_v19 = vrot.slane %v2404_v46, 5  ;;  %v396_v16 = vshrl.u32 %v2697_v31, 16 }
  0x4e   :  { %2034 = vmatmul.mubr.bf16.gmra.mrb[4].mxu0 %v1823_v53  ;;  %v379_v12 = vrot.slane %v378_v3, 4  ;;  %v389_v24 = vrot.slane %v388_v57, 4  ;;  %v399_v13 = vshll.u32 %v2697_v31, 16  ;;  %1954 = vmatmul.mubr.bf16.gmra.mrb[20].mxu1 %v1751_v48  ;;  %v405_v42 = vshll.u32 %v2704_v59, 16  ;;  %v2743_v53 = vld [vmem:[%s2928_s0 + $0xb0] sm:$0x1] }
  0x4f   :  { %v1112_v55 = vsel %vm2558_vm5, %v1792_v1, %v1111_v35  ;;  %v1113_v18 = vrot.slane %v1111_v35, 4  ;;  %v409_v46 = vshrl.u32 %v2704_v59, 16  ;;  %v398_v27 = vrot.slane %v396_v16, 4 }
  0x50   :  { %v384_v56 = vsel %vm2316_vm2, %v379_v12, %v383_v37  ;;  %v394_v11 = vsel %vm2316_vm2, %v389_v24, %v393_v0  ;;  %v401_v28 = vrot.slane %v399_v13, 5  ;;  %v407_v25 = vrot.slane %v405_v42, 5  ;;  %v2755_v24 = vld [vmem:[%s2928_s0 + $0xb4] sm:$0xf]  ;;  %v2766_v42 = vld [vmem:[%s2928_s0 + $0xb8] sm:$0xf] }
  0x51   :  { %v1752_v29 = vcombine.low %v384_v56, %v394_v11  ;;  %v1115_v61 = vsel %vm2558_vm5, %v1113_v18, %v1114_v19  ;;  %v411_v62 = vrot.slane %v409_v46, 4  ;;  %v415_v49 = vshll.u32 %v2715_v20, 16 }
  0x52   :  { %v1824_v30 = vcombine.low %v1112_v55, %v1115_v61  ;;  %v402_v36 = vor.u32 %v401_v28, %v398_v27  ;;  %v1793_v37 = vrot.slane %v2413_v58, 9  ;;  %v1118_v52 = vrot.slane %v2421_v2, 5 }
  0x53   :  { %1957 = vmatprep.mubr.bf16.mxu1 %v1752_v29  ;;  %v412_v17 = vor.u32 %v411_v62, %v407_v25  ;;  %v1121_v34 = vrot.slane %v2426_v4, 5  ;;  %v420_v38 = vshrl.u32 %v2726_v8, 16  ;;  %v417_v43 = vrot.slane %v415_v49, 5 }
  0x54   :  { %2037 = vmatprep.mubr.bf16.mxu0 %v1824_v30  ;;  %v403_v1 = vrot.slane %v402_v36, 4  ;;  %v423_v3 = vshll.u32 %v2726_v8, 16  ;;  %v429_v58 = vshll.u32 %v2733_v6, 16  ;;  %v1119_v2 = vsel %vm2558_vm5, %v1793_v37, %v1118_v52  ;;  %v2774_v30 = vld [vmem:[%s2928_s0 + $0xbc] sm:$0x1] }
  0x55   :  { %v413_v57 = vrot.slane %v412_v17, 4  ;;  %v1120_v48 = vrot.slane %v1118_v52, 4  ;;  %v422_v4 = vrot.slane %v420_v38, 4  ;;  %v433_v12 = vshrl.u32 %v2733_v6, 16 }
  0x56   :  { %v408_v0 = vsel %vm2316_vm2, %v403_v1, %v407_v25  ;;  %v425_v35 = vrot.slane %v423_v3, 5  ;;  %v431_v19 = vrot.slane %v429_v58, 5  ;;  %v439_v55 = vshll.u32 %v2743_v53, 16 }
  0x57   :  { %v418_v16 = vsel %vm2316_vm2, %v413_v57, %v417_v43  ;;  %v1122_v13 = vsel %vm2558_vm5, %v1120_v48, %v1121_v34  ;;  %v1794_v18 = vrot.slane %v2448_v32, 9  ;;  %v435_v27 = vrot.slane %v433_v12, 4 }
  0x58   :  { %v1753_v46 = vcombine.low %v408_v0, %v418_v16  ;;  %v1825_v56 = vcombine.low %v1119_v2, %v1122_v13  ;;  %v426_v11 = vor.u32 %v425_v35, %v422_v4  ;;  %v441_v28 = vrot.slane %v439_v55, 5 }
  0x59   :  { %v1125_v29 = vrot.slane %v2459_v41, 5  ;;  %v1128_v61 = vrot.slane %v2468_v54, 5  ;;  %v444_v25 = vshrl.u32 %v2755_v24, 16  ;;  %v436_v32 = vor.u32 %v435_v27, %v431_v19 }
  0x5a   :  { %1958 = vmatmul.mubr.bf16.gmra.mrb[24].mxu1 %v1753_v46  ;;  %2038 = vmatmul.mubr.bf16.gmra.mrb[8].mxu0 %v1825_v56  ;;  %v427_v62 = vrot.slane %v426_v11, 4  ;;  %v447_v36 = vshll.u32 %v2755_v24, 16  ;;  %v453_v49 = vshll.u32 %v2766_v42, 16  ;;  %v457_v17 = vshrl.u32 %v2766_v42, 16 }
  0x5b   :  { %v1126_v41 = vsel %vm2558_vm5, %v1794_v18, %v1125_v29  ;;  %v1127_v37 = vrot.slane %v1125_v29, 4  ;;  %v446_v54 = vrot.slane %v444_v25, 4  ;;  %v437_v34 = vrot.slane %v436_v32, 4 }
  0x5c   :  { %v432_v52 = vsel %vm2316_vm2, %v427_v62, %v431_v19  ;;  %v449_v38 = vrot.slane %v447_v36, 5  ;;  %v455_v1 = vrot.slane %v453_v49, 5  ;;  %v459_v3 = vrot.slane %v457_v17, 4 }
  0x5d   :  { %v1129_v43 = vsel %vm2558_vm5, %v1127_v37, %v1128_v61  ;;  %v463_v58 = vshll.u32 %v2774_v30, 16  ;;  %v1795_v57 = vrot.slane %v2473_v60, 9  ;;  %v442_v2 = vsel %vm2316_vm2, %v437_v34, %v441_v28 }
  0x5e   :  { %v1826_v48 = vcombine.low %v1126_v41, %v1129_v43  ;;  %v450_v4 = vor.u32 %v449_v38, %v446_v54  ;;  %v1132_v0 = vrot.slane %v2498_v26, 5  ;;  %v1754_v35 = vcombine.low %v432_v52, %v442_v2 }
  0x5f   :  { %v460_v19 = vor.u32 %v459_v3, %v455_v1  ;;  %v465_v12 = vrot.slane %v463_v58, 5  ;;  %v1135_v16 = vrot.slane %v2503_v33, 5  ;;  %v1796_v46 = vrot.slane %v2516_v50, 9 }
  0x60   :  { %2041 = vmatprep.mubr.bf16.mxu0 %v1826_v48  ;;  %v451_v13 = vrot.slane %v450_v4, 4  ;;  %v1133_v55 = vsel %vm2558_vm5, %v1795_v57, %v1132_v0  ;;  %v1134_v18 = vrot.slane %v1132_v0, 4  ;;  %1961 = vmatprep.mubr.bf16.mxu1 %v1754_v35  ;;  %v1139_v56 = vrot.slane %v2528_v45, 5 }
  0x61   :  { %v461_v60 = vrot.slane %v460_v19, 4  ;;  %v1142_v11 = vrot.slane %v2538_v39, 5  ;;  %v1772_v27 = vcombine.low %v2516_v50, %v2528_v45  ;;  %v1797_v28 = vrot.slane %v2552_v5, 9 }
  0x62   :  { %v456_v26 = vsel %vm2316_vm2, %v451_v13, %v455_v1  ;;  %v1136_v33 = vsel %vm2558_vm5, %v1134_v18, %v1135_v16  ;;  %v1140_v25 = vsel %vm2558_vm5, %v1796_v46, %v1139_v56  ;;  %v1141_v62 = vrot.slane %v1139_v56, 4 }
  0x63   :  { %v466_v29 = vsel %vm2316_vm2, %v461_v60, %v465_v12  ;;  %v1827_v61 = vcombine.low %v1133_v55, %v1136_v33  ;;  %v1146_v32 = vrot.slane %v2570_v10, 5  ;;  %v1149_v36 = vrot.slane %v2585_v23, 5 }
  0x64   :  { %v1755_v39 = vcombine.low %v456_v26, %v466_v29  ;;  %v1143_v49 = vsel %vm2558_vm5, %v1141_v62, %v1142_v11  ;;  %v1798_v50 = vrot.slane %v2600_v14, 9  ;;  %v1153_v45 = vrot.slane %v2605_v22, 5 }
  0x65   :  { %2042 = vmatmul.mubr.bf16.gmra.mrb[12].mxu0 %v1827_v61  ;;  %v1156_v40 = vrot.slane %v2615_v63, 5  ;;  %v1828_v41 = vcombine.low %v1140_v25, %v1143_v49  ;;  %v1147_v37 = vsel %vm2558_vm5, %v1797_v28, %v1146_v32  ;;  %v1148_v54 = vrot.slane %v1146_v32, 4 }
  0x66   :  { %1962 = vmatmul.mubr.bf16.gmra.mrb[28].mxu1 %v1755_v39  ;;  %v1154_v23 = vsel %vm2558_vm5, %v1798_v50, %v1153_v45  ;;  %v1155_v17 = vrot.slane %v1153_v45, 4  ;;  %v1160_v52 = vrot.slane %v2643_v44, 5  ;;  %v1773_v34 = vcombine.low %v2552_v5, %v2570_v10 }
  0x67   :  { %1997 = vmatprep.mubr.bf16.mxu1 %v1772_v27  ;;  %2045 = vmatprep.mubr.bf16.mxu0 %v1828_v41  ;;  %v1150_v63 = vsel %vm2558_vm5, %v1148_v54, %v1149_v36  ;;  %v1799_v38 = vrot.slane %v2635_v21, 9  ;;  %v1774_v43 = vcombine.low %v2600_v14, %v2605_v22  ;;  %v1163_v58 = vrot.slane %v2649_v9, 5 }
  0x68   :  { %v1829_v1 = vcombine.low %v1147_v37, %v1150_v63  ;;  %v1157_v3 = vsel %vm2558_vm5, %v1155_v17, %v1156_v40  ;;  %v1162_v2 = vrot.slane %v1160_v52, 4  ;;  %v1800_v48 = vrot.slane %v2665_v7, 9 }
  0x69   :  { %v1830_v57 = vcombine.low %v1154_v23, %v1157_v3  ;;  %v1167_v5 = vrot.slane %v2672_v15, 5  ;;  %v1170_v10 = vrot.slane %v2681_v51, 5  ;;  %v1801_v4 = vrot.slane %v2697_v31, 9 }
  0x6a   :  { %v1174_v0 = vrot.slane %v2704_v59, 5  ;;  %v1177_v35 = vrot.slane %v2715_v20, 5  ;;  %v1161_v14 = vsel %vm2558_vm5, %v1799_v38, %v1160_v52  ;;  %v1802_v12 = vrot.slane %v2726_v8, 9 }
  0x6b   :  { %v1169_v22 = vrot.slane %v1167_v5, 4  ;;  %v1181_v16 = vrot.slane %v2733_v6, 5  ;;  %v1164_v51 = vsel %vm2558_vm5, %v1162_v2, %v1163_v58  ;;  %v1168_v20 = vsel %vm2558_vm5, %v1800_v48, %v1167_v5 }
  0x6c   :  { %v1175_v9 = vsel %vm2558_vm5, %v1801_v4, %v1174_v0  ;;  %v1176_v19 = vrot.slane %v1174_v0, 4  ;;  %v1184_v13 = vrot.slane %v2743_v53, 5  ;;  %v1803_v55 = vrot.slane %v2755_v24, 9 }
  0x6d   :  { %2046 = vmatmul.mubr.bf16.gmra.mrb[16].mxu0 %v1829_v1  ;;  %v1171_v18 = vsel %vm2558_vm5, %v1169_v22, %v1170_v10  ;;  %v1182_v46 = vsel %vm2558_vm5, %v1802_v12, %v1181_v16  ;;  %v1183_v56 = vrot.slane %v1181_v16, 4  ;;  %v1188_v26 = vrot.slane %v2766_v42, 5 }
  0x6e   :  { %1998 = vmatmul.mubr.bf16.vlgmr.msra.gmra.mrb[16].mxu1 %v1773_v34  ;;  %2049 = vmatprep.mubr.bf16.mxu0 %v1830_v57  ;;  %v1178_v60 = vsel %vm2558_vm5, %v1176_v19, %v1177_v35  ;;  %v1191_v33 = vrot.slane %v2774_v30, 5  ;;  %v1775_v53 = vcombine.low %v2635_v21, %v2643_v44  ;;  %v1831_v27 = vcombine.low %v1161_v14, %v1164_v51 }
  0x6f   :  { %2001 = vmatprep.mubr.bf16.mxu1 %v1774_v43  ;;  %v1833_v11 = vcombine.low %v1175_v9, %v1178_v60  ;;  %v1185_v28 = vsel %vm2558_vm5, %v1183_v56, %v1184_v13  ;;  %v1832_v29 = vcombine.low %v1168_v20, %v1171_v18  ;;  %v1189_v25 = vsel %vm2558_vm5, %v1803_v55, %v1188_v26  ;;  %v2884_v13 = vld [vmem:[%s2929_s2] ss:$0 sm:$0xff] }
  0x70   :  { %v1834_v61 = vcombine.low %v1182_v46, %v1185_v28  ;;  %v1190_v62 = vrot.slane %v1188_v26, 4  ;;  %v1776_v39 = vcombine.low %v2665_v7, %v2672_v15  ;;  %v1777_v21 = vcombine.low %v2697_v31, %v2704_v59 }
  0x71   :  { %v1778_v44 = vcombine.low %v2726_v8, %v2733_v6  ;;  %v1779_v7 = vcombine.low %v2755_v24, %v2766_v42 }
  0x72   :  { %v1192_v32 = vsel %vm2558_vm5, %v1190_v62, %v1191_v33 }
  0x73   :  { %v1835_v30 = vcombine.low %v1189_v25, %v1192_v32 }
  0x75   :  { %2050 = vmatmul.mubr.bf16.gmra.mrb[20].mxu0 %v1831_v27 }
  0x76   :  { %2002 = vmatmul.mubr.bf16.gmra.mrb[20].mxu1 %v1775_v53  ;;  %2053 = vmatprep.mubr.bf16.mxu0 %v1832_v29 }
  0x77   :  { %2005 = vmatprep.mubr.bf16.mxu1 %v1776_v39 }
  0x7d   :  { %2054 = vmatmul.mubr.bf16.gmra.mrb[24].mxu0 %v1833_v11 }
  0x7e   :  { %2006 = vmatmul.mubr.bf16.gmra.mrb[24].mxu1 %v1777_v21  ;;  %2057 = vmatprep.mubr.bf16.mxu0 %v1834_v61 }
  0x7f   :  { %2009 = vmatprep.mubr.bf16.mxu1 %v1778_v44 }
  0x85   :  { %2058 = vmatmul.mubr.bf16.gmra.mrb[28].mxu0 %v1835_v30 }
  0x86   :  { %2010 = vmatmul.mubr.bf16.gmra.mrb[28].mxu1 %v1779_v7 }
  0xf5   :  { %v1935_v47 = vpop.f32.mrb[0].mxu1 }
  0xf6   :  { %v630_v15 = vpop.f32.mrb[1].mxu1 }
  0xf7   :  { %v1936_v36 = vpop.f32.mrb[2].mxu1 }
  0xf8   :  { %v633_v49 = vpop.f32.mrb[3].mxu1 }
  0xfd   :  { %v1939_v50 = vpop.f32.mrb[4].mxu1 }
  0xfe   :  { %v646_v45 = vpop.f32.mrb[5].mxu1 }
  0xff   :  { %v1940_v40 = vpop.f32.mrb[6].mxu1 }
 0x100   :  { %v649_v31 = vpop.f32.mrb[7].mxu1 }
 0x105   :  { %v1943_v59 = vpop.f32.mrb[8].mxu1 }
 0x106   :  { %v662_v41 = vpop.f32.mrb[9].mxu1 }
 0x107   :  { %v1944_v8 = vpop.f32.mrb[10].mxu1 }
 0x108   :  { %v2871_v6 = vpop.f32.mrb[11].mxu1 }
 0x10d   :  { %v2873_v37 = vpop.f32.mrb[12].mxu1 }
 0x10e   :  { %v2875_v54 = vpop.f32.mrb[13].mxu1 }
 0x10f   :  { %v2877_v24 = vpop.f32.mrb[14].mxu1 }
 0x110   :  { %v2879_v42 = vpop.f32.mrb[15].mxu1 }
 0x116   :  { %v2031_v23 = vpop.f32.mrb[0].mxu0 }
 0x117   :  { %v2077_v17 = vadd.f32 %v2031_v23, %v1935_v47  ;;  %v1356_v52 = vpop.f32.mrb[1].mxu0 }
 0x118   :  { %v2078_v34 = vadd.f32 %v1356_v52, %v630_v15  ;;  %v2032_v63 = vpop.f32.mrb[2].mxu0 }
 0x119   :  { %v2079_v38 = vadd.f32 %v2032_v63, %v1936_v36  ;;  %v1359_v1 = vpop.f32.mrb[3].mxu0 }
 0x11a   :  { %v2080_v43 = vadd.f32 %v1359_v1, %v633_v49 }
 0x11b   :  { %v1522_v3 = vmax.f32 %v2077_v17, %v2079_v38 }
 0x11c   :  { %v1515_v58 = vmax.f32 %v2078_v34, %v2080_v43 }
 0x11d   :  { %v1523_v57 = vrot.slane %v1522_v3, 4 }
 0x11e   :  { %v1516_v2 = vrot.slane %v1515_v58, 4 }
 0x11f   :  { %v1524_v48 = vmax.f32 %v1522_v3, %v1523_v57 }
 0x120   :  { %v1517_v5 = vmax.f32 %v1515_v58, %v1516_v2 }
 0x121   :  { %v1525_v10 = vrot.slane %v1524_v48, 2  ;;  %v2035_v0 = vpop.f32.mrb[4].mxu0 }
 0x122   :  { %v1518_v4 = vrot.slane %v1517_v5, 2  ;;  %v2081_v14 = vadd.f32 %v2035_v0, %v1939_v50  ;;  %v1372_v22 = vpop.f32.mrb[5].mxu0 }
 0x123   :  { %v1526_v35 = vmax.f32 %v1524_v48, %v1525_v10  ;;  %v2082_v19 = vadd.f32 %v1372_v22, %v646_v45  ;;  %v2036_v12 = vpop.f32.mrb[6].mxu0 }
 0x124   :  { %v1519_v9 = vmax.f32 %v1517_v5, %v1518_v4  ;;  %v2083_v51 = vadd.f32 %v2036_v12, %v1940_v40  ;;  %v1375_v20 = vpop.f32.mrb[7].mxu0 }
 0x125   :  { %v1527_v16 = vrot.slane %v1526_v35, 1  ;;  %v2084_v18 = vadd.f32 %v1375_v20, %v649_v31 }
 0x126   :  { %v1520_v55 = vrot.slane %v1519_v9, 1  ;;  %v1536_v46 = vmax.f32 %v2081_v14, %v2083_v51 }
 0x127   :  { %v1528_v60 = vmax.f32 %v1526_v35, %v1527_v16  ;;  %v1529_v11 = vmax.f32 %v2082_v19, %v2084_v18 }
 0x128   :  { %v1521_v56 = vmax.f32 %v1519_v9, %v1520_v55  ;;  %v1537_v33 = vrot.slane %v1536_v46, 4 }
 0x129   :  { %v1634_v26 = vadd.f32 %v2884_v13, %v1528_v60  ;;  %v1530_v27 = vrot.slane %v1529_v11, 4 }
 0x12a   :  { %v1633_v53 = vadd.f32 %v2884_v13, %v1521_v56  ;;  %v1538_v29 = vmax.f32 %v1536_v46, %v1537_v33 }
 0x12b   :  { %v1650_v28 = vmax.f32 %v1634_v26, 0.0  ;;  %v1531_v25 = vmax.f32 %v1529_v11, %v1530_v27 }
 0x12c   :  { %v1649_v61 = vmax.f32 %v1633_v53, 0.0  ;;  %v1539_v39 = vrot.slane %v1538_v29, 2 }
 0x12d   :  { %v1681_v62 = vrot.slane %v1650_v28, 7  ;;  %v1532_v32 = vrot.slane %v1531_v25, 2  ;;  %v2039_v30 = vpop.f32.mrb[8].mxu0 }
 0x12e   :  { %v1540_v44 = vmax.f32 %v1538_v29, %v1539_v39  ;;  %v2085_v7 = vadd.f32 %v2039_v30, %v1943_v59  ;;  %v1388_v47 = vpop.f32.mrb[9].mxu0 }
 0x12f   :  { %v1683_v21 = vsel %vm1682_vm6, %v1681_v62, %v1649_v61  ;;  %v1533_v15 = vmax.f32 %v1531_v25, %v1532_v32  ;;  %v2086_v36 = vadd.f32 %v1388_v47, %v662_v41  ;;  %v2040_v49 = vpop.f32.mrb[10].mxu0 }
 0x130   :  { %v1541_v50 = vrot.slane %v1540_v44, 1  ;;  %v2087_v45 = vadd.f32 %v2040_v49, %v1944_v8  ;;  %v1391_v40 = vpop.f32.mrb[11].mxu0 }
 0x131   :  { %v1534_v31 = vrot.slane %v1533_v15, 1  ;;  %v2088_v23 = vadd.f32 %v1391_v40, %v2871_v6 }
 0x132   :  { %v1542_v17 = vmax.f32 %v1540_v44, %v1541_v50  ;;  %v1550_v52 = vmax.f32 %v2085_v7, %v2087_v45 }
 0x133   :  { %v1535_v34 = vmax.f32 %v1533_v15, %v1534_v31  ;;  %v1543_v63 = vmax.f32 %v2086_v36, %v2088_v23 }
 0x134   :  { %v1636_v38 = vadd.f32 %v2884_v13, %v1542_v17  ;;  %v1551_v1 = vrot.slane %v1550_v52, 4 }
 0x135   :  { %v1635_v43 = vadd.f32 %v2884_v13, %v1535_v34  ;;  %v1544_v59 = vrot.slane %v1543_v63, 4 }
 0x136   :  { %v1652_v3 = vmax.f32 %v1636_v38, 0.0  ;;  %v1552_v58 = vmax.f32 %v1550_v52, %v1551_v1 }
 0x137   :  { %v1651_v41 = vmax.f32 %v1635_v43, 0.0  ;;  %v1545_v57 = vmax.f32 %v1543_v63, %v1544_v59 }
 0x138   :  { %v1553_v8 = vrot.slane %v1552_v58, 2  ;;  %v2043_v2 = vpop.f32.mrb[12].mxu0  ;;  %v1687_v4 = vrot.slane %v1652_v3, 5 }
 0x139   :  { %v1684_v48 = vrot.slane %v1651_v41, 6  ;;  %v1546_v5 = vrot.slane %v1545_v57, 2  ;;  %v2089_v6 = vadd.f32 %v2043_v2, %v2873_v37  ;;  %v1404_v10 = vpop.f32.mrb[13].mxu0 }
 0x13a   :  { %v1554_v0 = vmax.f32 %v1552_v58, %v1553_v8  ;;  %v2090_v35 = vadd.f32 %v1404_v10, %v2875_v54  ;;  %v2044_v14 = vpop.f32.mrb[14].mxu0 }
 0x13b   :  { %v1686_v22 = vsel %vm1685_vm7, %v1684_v48, %v1683_v21  ;;  %v1547_v9 = vmax.f32 %v1545_v57, %v1546_v5  ;;  %v2091_v19 = vadd.f32 %v2044_v14, %v2877_v24  ;;  %v1407_v12 = vpop.f32.mrb[15].mxu0 }
 0x13c   :  { %v1555_v16 = vrot.slane %v1554_v0, 1  ;;  %v1689_v51 = vsel %vm1688_vm8, %v1687_v4, %v1686_v22  ;;  %v2092_v20 = vadd.f32 %v1407_v12, %v2879_v42 }
 0x13d   :  { %v1548_v55 = vrot.slane %v1547_v9, 1  ;;  %v1564_v18 = vmax.f32 %v2089_v6, %v2091_v19 }
 0x13e   :  { %v1556_v37 = vmax.f32 %v1554_v0, %v1555_v16  ;;  %v1557_v60 = vmax.f32 %v2090_v35, %v2092_v20 }
 0x13f   :  { %v1549_v46 = vmax.f32 %v1547_v9, %v1548_v55  ;;  %v1565_v56 = vrot.slane %v1564_v18, 4 }
 0x140   :  { %v1638_v54 = vadd.f32 %v2884_v13, %v1556_v37  ;;  %v1558_v11 = vrot.slane %v1557_v60, 4  ;;  %v2047_v26 = vpop.f32.mrb[16].mxu0 }
 0x141   :  { %v1637_v33 = vadd.f32 %v2884_v13, %v1549_v46  ;;  %v1566_v53 = vmax.f32 %v1564_v18, %v1565_v56  ;;  %v1999_v24 = vpop.f32.mrb[16].mxu1  ;;  %v1420_v27 = vpop.f32.mrb[17].mxu0 }
 0x142   :  { %v1654_v28 = vmax.f32 %v1638_v54, 0.0  ;;  %v1559_v29 = vmax.f32 %v1557_v60, %v1558_v11  ;;  %v2093_v61 = vadd.f32 %v2047_v26, %v1999_v24  ;;  %v999_v25 = vpop.f32.mrb[17].mxu1  ;;  %v2048_v42 = vpop.f32.mrb[18].mxu0 }
 0x143   :  { %v1653_v62 = vmax.f32 %v1637_v33, 0.0  ;;  %v1567_v39 = vrot.slane %v1566_v53, 2  ;;  %v2094_v32 = vadd.f32 %v1420_v27, %v999_v25  ;;  %v2000_v30 = vpop.f32.mrb[18].mxu1  ;;  %v1423_v21 = vpop.f32.mrb[19].mxu0 }
 0x144   :  { %v1560_v44 = vrot.slane %v1559_v29, 2  ;;  %v2095_v7 = vadd.f32 %v2048_v42, %v2000_v30  ;;  %v1002_v47 = vpop.f32.mrb[19].mxu1  ;;  %v1693_v50 = vrot.slane %v1654_v28, 3 }
 0x145   :  { %v1690_v15 = vrot.slane %v1653_v62, 4  ;;  %v1568_v36 = vmax.f32 %v1566_v53, %v1567_v39  ;;  %v2096_v49 = vadd.f32 %v1423_v21, %v1002_v47 }
 0x146   :  { %v1561_v45 = vmax.f32 %v1559_v29, %v1560_v44  ;;  %v1578_v40 = vmax.f32 %v2093_v61, %v2095_v7 }
 0x147   :  { %v1692_v31 = vsel %vm1691_vm9, %v1690_v15, %v1689_v51  ;;  %v1569_v23 = vrot.slane %v1568_v36, 1  ;;  %v1571_v17 = vmax.f32 %v2094_v32, %v2096_v49 }
 0x148   :  { %v1562_v52 = vrot.slane %v1561_v45, 1  ;;  %v1695_v34 = vsel %vm1694_vm10, %v1693_v50, %v1692_v31  ;;  %v1579_v63 = vrot.slane %v1578_v40, 4  ;;  %v2051_v38 = vpop.f32.mrb[20].mxu0 }
 0x149   :  { %v1570_v1 = vmax.f32 %v1568_v36, %v1569_v23  ;;  %v1572_v43 = vrot.slane %v1571_v17, 4  ;;  %v2003_v59 = vpop.f32.mrb[20].mxu1  ;;  %v1436_v3 = vpop.f32.mrb[21].mxu0 }
 0x14a   :  { %v1563_v58 = vmax.f32 %v1561_v45, %v1562_v52  ;;  %v1580_v41 = vmax.f32 %v1578_v40, %v1579_v63  ;;  %v2097_v57 = vadd.f32 %v2051_v38, %v2003_v59  ;;  %v1015_v8 = vpop.f32.mrb[21].mxu1  ;;  %v2052_v2 = vpop.f32.mrb[22].mxu0 }
 0x14b   :  { %v1640_v48 = vadd.f32 %v2884_v13, %v1570_v1  ;;  %v1573_v5 = vmax.f32 %v1571_v17, %v1572_v43  ;;  %v2098_v6 = vadd.f32 %v1436_v3, %v1015_v8  ;;  %v2004_v10 = vpop.f32.mrb[22].mxu1  ;;  %v1439_v4 = vpop.f32.mrb[23].mxu0 }
 0x14c   :  { %v1639_v0 = vadd.f32 %v2884_v13, %v1563_v58  ;;  %v1581_v35 = vrot.slane %v1580_v41, 2  ;;  %v2099_v14 = vadd.f32 %v2052_v2, %v2004_v10  ;;  %v1018_v22 = vpop.f32.mrb[23].mxu1 }
 0x14d   :  { %v1656_v9 = vmax.f32 %v1640_v48, 0.0  ;;  %v1574_v19 = vrot.slane %v1573_v5, 2  ;;  %v2100_v12 = vadd.f32 %v1439_v4, %v1018_v22 }
 0x14e   :  { %v1655_v16 = vmax.f32 %v1639_v0, 0.0  ;;  %v1582_v51 = vmax.f32 %v1580_v41, %v1581_v35  ;;  %v1592_v20 = vmax.f32 %v2097_v57, %v2099_v14 }
 0x14f   :  { %v1575_v55 = vmax.f32 %v1573_v5, %v1574_v19  ;;  %v1585_v18 = vmax.f32 %v2098_v6, %v2100_v12  ;;  %v1699_v54 = vrot.slane %v1656_v9, 1 }
 0x150   :  { %v1696_v37 = vrot.slane %v1655_v16, 2  ;;  %v1583_v60 = vrot.slane %v1582_v51, 1  ;;  %v1593_v46 = vrot.slane %v1592_v20, 4  ;;  %v2055_v56 = vpop.f32.mrb[24].mxu0 }
 0x151   :  { %v1576_v11 = vrot.slane %v1575_v55, 1  ;;  %v1586_v26 = vrot.slane %v1585_v18, 4  ;;  %v2007_v33 = vpop.f32.mrb[24].mxu1  ;;  %v1452_v53 = vpop.f32.mrb[25].mxu0 }
 0x152   :  { %v1698_v24 = vsel %vm1697_vm11, %v1696_v37, %v1695_v34  ;;  %v1584_v27 = vmax.f32 %v1582_v51, %v1583_v60  ;;  %v1594_v28 = vmax.f32 %v1592_v20, %v1593_v46  ;;  %v2101_v29 = vadd.f32 %v2055_v56, %v2007_v33  ;;  %v1031_v61 = vpop.f32.mrb[25].mxu1  ;;  %v2056_v25 = vpop.f32.mrb[26].mxu0 }
 0x153   :  { %v1701_v42 = vsel %vm1700_vm12, %v1699_v54, %v1698_v24  ;;  %v1577_v62 = vmax.f32 %v1575_v55, %v1576_v11  ;;  %v1587_v39 = vmax.f32 %v1585_v18, %v1586_v26  ;;  %v2102_v32 = vadd.f32 %v1452_v53, %v1031_v61  ;;  %v2008_v30 = vpop.f32.mrb[26].mxu1  ;;  %v1455_v21 = vpop.f32.mrb[27].mxu0 }
 0x154   :  { %1718 = vst [vmem:[%s2930_s3] sm:$0xff] %v1701_v42  ;;  %v1642_v44 = vadd.f32 %v2884_v13, %v1584_v27  ;;  %v1595_v7 = vrot.slane %v1594_v28, 2  ;;  %v2103_v47 = vadd.f32 %v2056_v25, %v2008_v30  ;;  %v1034_v15 = vpop.f32.mrb[27].mxu1 }
 0x155   :  { %v1641_v36 = vadd.f32 %v2884_v13, %v1577_v62  ;;  %v1588_v49 = vrot.slane %v1587_v39, 2  ;;  %v2104_v50 = vadd.f32 %v1455_v21, %v1034_v15 }
 0x156   :  { %v1658_v45 = vmax.f32 %v1642_v44, 0.0  ;;  %v1596_v40 = vmax.f32 %v1594_v28, %v1595_v7  ;;  %v1606_v31 = vmax.f32 %v2101_v29, %v2103_v47 }
 0x157   :  { %v1657_v23 = vmax.f32 %v1641_v36, 0.0  ;;  %v1589_v17 = vmax.f32 %v1587_v39, %v1588_v49  ;;  %v1599_v52 = vmax.f32 %v2102_v32, %v2104_v50 }
 0x158   :  { %v1702_v34 = vrot.slane %v1658_v45, 7  ;;  %v1597_v63 = vrot.slane %v1596_v40, 1  ;;  %v1607_v38 = vrot.slane %v1606_v31, 4  ;;  %v2059_v1 = vpop.f32.mrb[28].mxu0 }
 0x159   :  { %v1590_v43 = vrot.slane %v1589_v17, 1  ;;  %v1600_v59 = vrot.slane %v1599_v52, 4  ;;  %v2011_v3 = vpop.f32.mrb[28].mxu1  ;;  %v1468_v58 = vpop.f32.mrb[29].mxu0 }
 0x15a   :  { %v1703_v41 = vsel %vm1682_vm6, %v1702_v34, %v1657_v23  ;;  %v1598_v57 = vmax.f32 %v1596_v40, %v1597_v63  ;;  %v1608_v8 = vmax.f32 %v1606_v31, %v1607_v38  ;;  %v2105_v2 = vadd.f32 %v2059_v1, %v2011_v3  ;;  %v1047_v48 = vpop.f32.mrb[29].mxu1  ;;  %v2060_v5 = vpop.f32.mrb[30].mxu0 }
 0x15b   :  { %v1591_v6 = vmax.f32 %v1589_v17, %v1590_v43  ;;  %v1601_v10 = vmax.f32 %v1599_v52, %v1600_v59  ;;  %v2106_v4 = vadd.f32 %v1468_v58, %v1047_v48  ;;  %v2012_v0 = vpop.f32.mrb[30].mxu1  ;;  %v1471_v35 = vpop.f32.mrb[31].mxu0 }
 0x15c   :  { %v1644_v14 = vadd.f32 %v2884_v13, %v1598_v57  ;;  %v1609_v22 = vrot.slane %v1608_v8, 2  ;;  %v2107_v9 = vadd.f32 %v2060_v5, %v2012_v0  ;;  %v1050_v19 = vpop.f32.mrb[31].mxu1 }
 0x15d   :  { %v1643_v12 = vadd.f32 %v2884_v13, %v1591_v6  ;;  %v1602_v16 = vrot.slane %v1601_v10, 2  ;;  %v2108_v51 = vadd.f32 %v1471_v35, %v1050_v19 }
 0x15e   :  { %v1660_v20 = vmax.f32 %v1644_v14, 0.0  ;;  %v1610_v55 = vmax.f32 %v1608_v8, %v1609_v22  ;;  %v1620_v18 = vmax.f32 %v2105_v2, %v2107_v9 }
 0x15f   :  { %v1659_v37 = vmax.f32 %v1643_v12, 0.0  ;;  %v1603_v60 = vmax.f32 %v1601_v10, %v1602_v16  ;;  %v1613_v46 = vmax.f32 %v2106_v4, %v2108_v51 }
 0x160   :  { %v1611_v56 = vrot.slane %v1610_v55, 1  ;;  %v1621_v54 = vrot.slane %v1620_v18, 4  ;;  %v1706_v53 = vrot.slane %v1660_v20, 5 }
 0x161   :  { %v1704_v11 = vrot.slane %v1659_v37, 6  ;;  %v1604_v26 = vrot.slane %v1603_v60, 1  ;;  %v1614_v33 = vrot.slane %v1613_v46, 4 }
 0x162   :  { %v1612_v24 = vmax.f32 %v1610_v55, %v1611_v56  ;;  %v1622_v27 = vmax.f32 %v1620_v18, %v1621_v54 }
 0x163   :  { %v1705_v28 = vsel %vm1685_vm7, %v1704_v11, %v1703_v41  ;;  %v1605_v29 = vmax.f32 %v1603_v60, %v1604_v26  ;;  %v1615_v61 = vmax.f32 %v1613_v46, %v1614_v33 }
 0x164   :  { %v1646_v25 = vadd.f32 %v2884_v13, %v1612_v24  ;;  %v1707_v42 = vsel %vm1688_vm8, %v1706_v53, %v1705_v28  ;;  %v1623_v62 = vrot.slane %v1622_v27, 2 }
 0x165   :  { %v1645_v39 = vadd.f32 %v2884_v13, %v1605_v29  ;;  %v1616_v32 = vrot.slane %v1615_v61, 2 }
 0x166   :  { %v1662_v30 = vmax.f32 %v1646_v25, 0.0  ;;  %v1624_v21 = vmax.f32 %v1622_v27, %v1623_v62 }
 0x167   :  { %v1661_v44 = vmax.f32 %v1645_v39, 0.0  ;;  %v1617_v7 = vmax.f32 %v1615_v61, %v1616_v32 }
 0x168   :  { %v1625_v47 = vrot.slane %v1624_v21, 1  ;;  %v1710_v49 = vrot.slane %v1662_v30, 3 }
 0x169   :  { %v1708_v15 = vrot.slane %v1661_v44, 4  ;;  %v1618_v36 = vrot.slane %v1617_v7, 1 }
 0x16a   :  { %v1626_v50 = vmax.f32 %v1624_v21, %v1625_v47 }
 0x16b   :  { %v1709_v45 = vsel %vm1691_vm9, %v1708_v15, %v1707_v42  ;;  %v1619_v40 = vmax.f32 %v1617_v7, %v1618_v36 }
 0x16c   :  { %v1648_v31 = vadd.f32 %v2884_v13, %v1626_v50  ;;  %v1711_v23 = vsel %vm1694_vm10, %v1710_v49, %v1709_v45 }
 0x16d   :  { %v1647_v17 = vadd.f32 %v2884_v13, %v1619_v40 }
 0x16e   :  { %v1664_v52 = vmax.f32 %v1648_v31, 0.0 }
 0x16f   :  { %v1663_v34 = vmax.f32 %v1647_v17, 0.0 }
 0x170   :  { %v1714_v38 = vrot.slane %v1664_v52, 1 }
 0x171   :  { %v1712_v63 = vrot.slane %v1663_v34, 2 }
 0x173   :  { %v1713_v1 = vsel %vm1697_vm11, %v1712_v63, %v1711_v23 }
 0x174   :  { %v1715_v43 = vsel %vm1700_vm12, %v1714_v38, %v1713_v1 }
 0x175   :  { %1719 = vst [vmem:[%s2930_s3 + $0x8] sm:$0xff] %v1715_v43 }

</bundles_post_ra>
